<compile_context>
chip_gen: v6e
topology: v6e:2x2x1
jax: 0.10.0
libtpu: 0.0.40
codegen_flags: <defaults>
</compile_context>

<pallas_src>
import jax
import jax.numpy as jnp
from jax import lax
from jax.experimental import pallas as pl
from jax.experimental.pallas import tpu as pltpu

EMB_DIM = 32
HIDDEN = 4 * EMB_DIM            # 128
DROPOUT_PCT = 0.2               # unused: eval-mode dropout is identity
LANES = 128
SUB_ROWS = 256                  # packed-row sub-tile inside the kernel
TARGET_PACKED_ROWS = 2048       # packed rows per grid step (~2 MiB f32 in+out)


def _round_up(x, m):
    return (x + m - 1) // m * m


def _choose_tile(packed_rows, target=TARGET_PACKED_ROWS, sub=SUB_ROWS):
    """Packed rows per grid step: big for HBM roofline, but >=2 steps for v7x's 2 TCs."""
    if packed_rows <= 8:
        return packed_rows                      # single block == full array dims
    half = pl.cdiv(packed_rows, 2)              # aim for at least 2 grid steps
    t = min(target, _round_up(half, 8))
    if t > sub:
        t = _round_up(t, sub)                   # keep divisible by the sub-tile
    return t


def make_ffn_kernel(sub_rows, n_sub, out_dtype):
    """Kernel over one (rows_per_tile, 128) packed block, looping over sub-tiles."""

    def kernel(x_ref, w1_ref, b1_ref, w2_ref, b2_ref, o_ref):
        # x_ref : (rows_per_tile, 128) f32 packed rows
        # w1_ref: (PACK*C, PACK*H) block-diag, compute dtype (bf16 or f32)
        # b1_ref: (1, PACK*H) f32 (bias tiled PACK times)
        # w2_ref: (PACK*H, PACK*C) block-diag, compute dtype
        # b2_ref: (1, PACK*C) f32
        # o_ref : (rows_per_tile, 128) out_dtype
        cdt = w1_ref.dtype

        def body(s, carry):
            r0 = pl.multiple_of(s * sub_rows, sub_rows) if n_sub > 1 else 0
            # in-kernel cast: free VPU op, keeps wrapper-side x traffic at 4 B/elem
            x = x_ref[pl.ds(r0, sub_rows), :].astype(cdt)
            h = jnp.dot(x, w1_ref[...], preferred_element_type=jnp.float32) + b1_ref[...]
            h = jnp.maximum(h, 0.0).astype(cdt)                     # ReLU
            y = jnp.dot(h, w2_ref[...], preferred_element_type=jnp.float32) + b2_ref[...]
            # Dropout(p=0.2) in eval mode is identity.
            o_ref[pl.ds(r0, sub_rows), :] = y.astype(out_dtype)
            return carry

        if n_sub == 1:
            body(0, 0)
        else:
            lax.fori_loop(0, n_sub, body, 0)

    return kernel


def pack_ffn_params(w1, b1, w2, b2, *, compute_dtype=jnp.bfloat16):
    """One-time packing of (C,H)/(H,C) weights into block-diagonal lane-packed form.

    Hoisted out of the forward path so the 4x-expanded weights are built once.
    """
    C, H = w1.shape
    assert LANES % C == 0, "emb_dim must divide 128 for lane packing"
    pack = LANES // C
    eye = jnp.eye(pack, dtype=jnp.float32)
    w1b = jnp.kron(eye, w1.astype(jnp.float32)).astype(compute_dtype)   # (pack*C, pack*H)
    w2b = jnp.kron(eye, w2.astype(jnp.float32)).astype(compute_dtype)   # (pack*H, pack*C)
    b1t = jnp.tile(b1.astype(jnp.float32), pack).reshape(1, pack * H)
    b2t = jnp.tile(b2.astype(jnp.float32), pack).reshape(1, pack * C)
    return w1b, b1t, w2b, b2t


def feed_forward(x, packed_params, *, out_dtype=jnp.float32):
    """x: (B, T, C) float32.  packed_params: output of pack_ffn_params."""
    w1b, b1t, w2b, b2t = packed_params
    B, T, C = x.shape
    assert LANES % C == 0
    pack = LANES // C
    PC_in = pack * C                       # 128
    PH = b1t.shape[1]                      # pack * H
    PC = b2t.shape[1]                      # pack * C
    assert PC == LANES and w1b.shape == (PC_in, PH) and w2b.shape == (PH, PC)

    N = B * T
    rem = N % pack
    x2d = x.reshape(N, C)
    if rem:
        # tiny (<pack rows) pad so rows pack into full 128-lane rows
        x2d = jnp.pad(x2d, ((0, pack - rem), (0, 0)))
    n_rows = x2d.shape[0]
    packed_rows = n_rows // pack
    x_packed = x2d.reshape(packed_rows, LANES)       # free row-major reshape; stays f32

    rows_per_tile = _choose_tile(packed_rows)
    sub_rows = min(SUB_ROWS, rows_per_tile)
    n_sub = rows_per_tile // sub_rows                # divides by construction
    grid = pl.cdiv(packed_rows, rows_per_tile)       # ragged tail masked by Pallas

    itemsize_w = jnp.dtype(w1b.dtype).itemsize
    out_itemsize = jnp.dtype(out_dtype).itemsize
    cost = pl.CostEstimate(
        flops=int(4 * packed_rows * LANES * PH),     # actual block-diag MACs on the MXU
        transcendentals=0,
        bytes_accessed=int(
            packed_rows * LANES * (4 + out_itemsize)             # f32 x in + out
            + (w1b.size + w2b.size) * itemsize_w
            + (b1t.size + b2t.size) * 4
        ),
    )

    kernel = make_ffn_kernel(sub_rows, n_sub, out_dtype)

    out_packed = pl.pallas_call(
        kernel,
        out_shape=jax.ShapeDtypeStruct((packed_rows, LANES), out_dtype),
        grid_spec=pltpu.PrefetchScalarGridSpec(
            num_scalar_prefetch=0,
            grid=(grid,),
            in_specs=[
                pl.BlockSpec((rows_per_tile, LANES), lambda i: (i, 0)),   # x (packed, f32)
                pl.BlockSpec((PC_in, PH), lambda i: (0, 0)),              # W1 block-diag
                pl.BlockSpec((1, PH), lambda i: (0, 0)),                  # b1 (tiled)
                pl.BlockSpec((PH, PC), lambda i: (0, 0)),                 # W2 block-diag
                pl.BlockSpec((1, PC), lambda i: (0, 0)),                  # b2 (tiled)
            ],
            out_specs=pl.BlockSpec((rows_per_tile, LANES), lambda i: (i, 0)),
        ),
        compiler_params=pltpu.CompilerParams(
            dimension_semantics=("parallel",),   # independent rows; shards across v7x TCs
        ),
        cost_estimate=cost,
    )(x_packed, w1b, b1t, w2b, b2t)

    out2d = out_packed.reshape(n_rows, C)
    if rem:
        out2d = out2d[:N]
    return out2d.reshape(B, T, C)


def init_params(key, emb_dim=EMB_DIM):
    """Deterministic init mimicking nn.Linear's U(-1/sqrt(fan_in), 1/sqrt(fan_in))."""
    hidden = 4 * emb_dim
    k1, k2, k3, k4 = jax.random.split(key, 4)
    bound1 = 1.0 / jnp.sqrt(emb_dim)
    bound2 = 1.0 / jnp.sqrt(hidden)
    # Stored pre-transposed to (in, out) so the kernel does x @ W directly.
    w1 = jax.random.uniform(k1, (emb_dim, hidden), jnp.float32, -bound1, bound1)
    b1 = jax.random.uniform(k2, (hidden,), jnp.float32, -bound1, bound1)
    w2 = jax.random.uniform(k3, (hidden, emb_dim), jnp.float32, -bound2, bound2)
    b2 = jax.random.uniform(k4, (emb_dim,), jnp.float32, -bound2, bound2)
    return w1, b1, w2, b2


if __name__ == "__main__":
    key = jax.random.PRNGKey(0)
    kx, kp = jax.random.split(key)

    B, T, C = 2, 8, EMB_DIM
    x = jax.random.normal(kx, (B, T, C), dtype=jnp.float32)
    w1, b1, w2, b2 = init_params(kp)

    # Pure-JAX f32 reference (eval mode => dropout is identity).
    ref = jnp.maximum(x @ w1 + b1, 0.0) @ w2 + b2

    # f32 compute path: tight check against the reference.
    params_f32 = pack_ffn_params(w1, b1, w2, b2, compute_dtype=jnp.float32)
    out_f32 = jax.block_until_ready(feed_forward(x, params_f32))
    assert out_f32.shape == (B, T, C)
    assert jnp.allclose(out_f32, ref, atol=1e-4, rtol=1e-4), "f32 mismatch vs reference"

    # bf16 compute path (default fast path, packed once, jitted wrapper).
    params_bf16 = pack_ffn_params(w1, b1, w2, b2)
    fwd = jax.jit(feed_forward)
    out = jax.block_until_ready(fwd(x, params_bf16))
    assert out.shape == (B, T, C)
    assert jnp.allclose(out, ref, atol=5e-2, rtol=5e-2), "bf16 mismatch vs reference"

    print("KERNEL_OK")
</pallas_src>

<mosaic_0001>
module attributes {stable_mosaic.version = 11 : i64} {
  func.func @kernel(%arg0: i32, %arg1: memref<4x128xf32, #tpu.memory_space<vmem>>, %arg2: memref<128x512xf32, #tpu.memory_space<vmem>>, %arg3: memref<1x512xf32, #tpu.memory_space<vmem>>, %arg4: memref<512x128xf32, #tpu.memory_space<vmem>>, %arg5: memref<1x128xf32, #tpu.memory_space<vmem>>, %arg6: memref<4x128xf32, #tpu.memory_space<vmem>>) attributes {dimension_semantics = [#tpu.dimension_semantics<parallel>], iteration_bounds = array<i64: 1>, scalar_prefetch = 0 : i64, scratch_operands = 0 : i64, tpu.core_type = #tpu.core_type<tc>, window_params = [{transform_indices = @transform_0, window_bounds = array<i64: 4, 128>}, {pipeline_mode = #tpu.pipeline_mode<synchronous>, transform_indices = @transform_1, window_bounds = array<i64: 128, 512>}, {pipeline_mode = #tpu.pipeline_mode<synchronous>, transform_indices = @transform_2, window_bounds = array<i64: 1, 512>}, {pipeline_mode = #tpu.pipeline_mode<synchronous>, transform_indices = @transform_3, window_bounds = array<i64: 512, 128>}, {pipeline_mode = #tpu.pipeline_mode<synchronous>, transform_indices = @transform_4, window_bounds = array<i64: 1, 128>}, {transform_indices = @transform_5, window_bounds = array<i64: 4, 128>}]} {
    %c0 = arith.constant 0 : index
    %c0_0 = arith.constant 0 : index
    %0 = vector.load %arg1[%c0, %c0_0] : memref<4x128xf32, #tpu.memory_space<vmem>>, vector<4x128xf32>
    %c0_1 = arith.constant 0 : index
    %c0_2 = arith.constant 0 : index
    %1 = vector.load %arg2[%c0_1, %c0_2] : memref<128x512xf32, #tpu.memory_space<vmem>>, vector<128x512xf32>
    %cst = arith.constant dense<0.000000e+00> : vector<4x512xf32>
    %2 = tpu.matmul %0, %1, %cst {dimension_numbers = #tpu.dot_dimension_numbers<[1], [0], [0], [1], [0, 0, 1, 1], [], []>} : vector<4x128xf32>, vector<128x512xf32>, vector<4x512xf32> -> vector<4x512xf32>
    %c0_3 = arith.constant 0 : index
    %c0_4 = arith.constant 0 : index
    %3 = vector.load %arg3[%c0_3, %c0_4] : memref<1x512xf32, #tpu.memory_space<vmem>>, vector<1x512xf32>
    %4 = vector.broadcast %3 : vector<1x512xf32> to vector<4x512xf32>
    %5 = arith.addf %2, %4 : vector<4x512xf32>
    %cst_5 = arith.constant 0.000000e+00 : f32
    %6 = vector.broadcast %cst_5 : f32 to vector<4x512xf32>
    %7 = arith.maximumf %5, %6 : vector<4x512xf32>
    %c0_6 = arith.constant 0 : index
    %c0_7 = arith.constant 0 : index
    %8 = vector.load %arg4[%c0_6, %c0_7] : memref<512x128xf32, #tpu.memory_space<vmem>>, vector<512x128xf32>
    %cst_8 = arith.constant dense<0.000000e+00> : vector<4x128xf32>
    %9 = tpu.matmul %7, %8, %cst_8 {dimension_numbers = #tpu.dot_dimension_numbers<[1], [0], [0], [1], [0, 0, 1, 1], [], []>} : vector<4x512xf32>, vector<512x128xf32>, vector<4x128xf32> -> vector<4x128xf32>
    %c0_9 = arith.constant 0 : index
    %c0_10 = arith.constant 0 : index
    %10 = vector.load %arg5[%c0_9, %c0_10] : memref<1x128xf32, #tpu.memory_space<vmem>>, vector<1x128xf32>
    %11 = vector.broadcast %10 : vector<1x128xf32> to vector<4x128xf32>
    %12 = arith.addf %9, %11 : vector<4x128xf32>
    %c0_11 = arith.constant 0 : index
    %c0_12 = arith.constant 0 : index
    %13 = vector.load %arg6[%c0_11, %c0_12] : memref<4x128xf32, #tpu.memory_space<vmem>>, vector<4x128xf32>
    tpu.vector_store %arg6[%c0_11, %c0_12], %12 {strides = array<i32>} : memref<4x128xf32, #tpu.memory_space<vmem>>, vector<4x128xf32>,
    return
  }
  func.func @transform_0(%arg0: i32) -> (i32, i32) {
    %c0_i32 = arith.constant 0 : i32
    %c0_i32_0 = arith.constant 0 : i32
    return %arg0, %c0_i32 : i32, i32
  }
  func.func @transform_1(%arg0: i32) -> (i32, i32) {
    %c0_i32 = arith.constant 0 : i32
    %c0_i32_0 = arith.constant 0 : i32
    %c0_i32_1 = arith.constant 0 : i32
    return %c0_i32, %c0_i32_0 : i32, i32
  }
  func.func @transform_2(%arg0: i32) -> (i32, i32) {
    %c0_i32 = arith.constant 0 : i32
    %c0_i32_0 = arith.constant 0 : i32
    %c0_i32_1 = arith.constant 0 : i32
    return %c0_i32, %c0_i32_0 : i32, i32
  }
  func.func @transform_3(%arg0: i32) -> (i32, i32) {
    %c0_i32 = arith.constant 0 : i32
    %c0_i32_0 = arith.constant 0 : i32
    %c0_i32_1 = arith.constant 0 : i32
    return %c0_i32, %c0_i32_0 : i32, i32
  }
  func.func @transform_4(%arg0: i32) -> (i32, i32) {
    %c0_i32 = arith.constant 0 : i32
    %c0_i32_0 = arith.constant 0 : i32
    %c0_i32_1 = arith.constant 0 : i32
    return %c0_i32, %c0_i32_0 : i32, i32
  }
  func.func @transform_5(%arg0: i32) -> (i32, i32) {
    %c0_i32 = arith.constant 0 : i32
    %c0_i32_0 = arith.constant 0 : i32
    return %arg0, %c0_i32 : i32, i32
  }
}

</mosaic_0001>

<bundles_post_ra>
// kernel: tpu_custom_call.1
= control target key start
LH: loop header
LB: loop body
LE: loop exit
PB: predicated region body
PF: predicated region fallthrough
CT: control target
= control target key end

     0   :  { %10 = vsyncpa [#allocation3], 0  ;;  %s781_s0 = inlined_call_operand.hbm [shape: f32[4,128], index: 0, kind: input, shape index: {}]   ;;  %s782_s1 = inlined_call_operand.hbm [shape: f32[128,512], index: 1, kind: input, shape index: {}]   ;;  %s783_s2 = inlined_call_operand.hbm [shape: f32[1,512], index: 2, kind: input, shape index: {}]   ;;  %s784_s3 = inlined_call_operand.hbm [shape: f32[512,128], index: 3, kind: input, shape index: {}]   ;;  %s785_s4 = inlined_call_operand.vmem [shape: f32[1,128], index: 4, kind: input, shape index: {}]   ;;  %s786_s5 = inlined_call_operand.hbm [shape: f32[4,128], index: 5, kind: output, shape index: {}]  }
   0x1   :  { %11 = vsyncpa [#allocation6], 0 }
   0x2   :  { %12 = vsyncpa [#allocation9], 0 }
   0x3   :  { %13 = vsyncpa [#allocation4], 0  ;;  %s723_s18 = smov [#allocation5]  }
   0x4   :  { %s29_s19 = sshll.u32 %s723_s18, 4  ;;  %s30_s19 = int_to_ptr.vmem [resolvable:$true] %s29_s19 }
   0x5   :  { %s623_s20 = scalar_lea.vmem %s30_s19, 8192  ;;  %p628_p1 = scmp.lt.s32.totalorder %s30_s19, %s30_s19 }
   0x6   :  { %p624_p0 = scmp.ne.s32.totalorder %s30_s19, %s623_s20  ;;  %p629_p2 = scmp.lt.s32.totalorder %s623_s20, %s623_s20 }
   0x8   :  { %p630_p3 = por %p629_p2, %p628_p1 }
   0xa   :  { %p631_p4 = pnand %p630_p3, %p624_p0 }
   0xc   :  { %634 = shalt.err (!%p631_p4)
}
   0xd   :  { %s724_s21 = smov 512   ;;  %s725_s22 = smov 32  }
   0xe   :  { %35 = dma.hbm_to_vmem [thread:$0]  %s782_s1, 8192, %s30_s19, [#allocation6], %s724_s21, %s724_s21, %s725_s22  }
   0xf   :  { %s726_s25 = smov [#allocation2]   ;;  %s727_s27 = smov [#allocation7]  }
  0x10   :  { %s20_s26 = sshll.u32 %s726_s25, 4  ;;  %s42_s28 = sshll.u32 %s727_s27, 4  ;;  %s21_s26 = int_to_ptr.vmem [resolvable:$true] %s20_s26  ;;  %s43_s28 = int_to_ptr.vmem [resolvable:$true] %s42_s28 }
  0x11   :  { %s643_s29 = scalar_lea.vmem %s21_s26, 64  ;;  %p648_p6 = scmp.lt.s32.totalorder %s21_s26, %s21_s26 }
  0x12   :  { %p644_p5 = scmp.ne.s32.totalorder %s21_s26, %s643_s29  ;;  %p649_p7 = scmp.lt.s32.totalorder %s643_s29, %s643_s29 }
  0x14   :  { %p650_p8 = por %p649_p7, %p648_p6 }
  0x16   :  { %p651_p9 = pnand %p650_p8, %p644_p5 }
  0x18   :  { %654 = shalt.err (!%p651_p9)
}
  0x19   :  { %23 = dma.hbm_to_vmem [thread:$0]  %s781_s0, 64, %s21_s26, [#allocation3]  }
  0x1a   :  { %s663_s7 = scalar_lea.vmem %s43_s28, 64  ;;  %p668_p11 = scmp.lt.s32.totalorder %s43_s28, %s43_s28 }
  0x1b   :  { %p664_p10 = scmp.ne.s32.totalorder %s43_s28, %s663_s7  ;;  %p669_p12 = scmp.lt.s32.totalorder %s663_s7, %s663_s7 }
  0x1d   :  { %p670_p13 = por %p669_p12, %p668_p11 }
  0x1f   :  { %p671_p0 = pnand %p670_p13, %p664_p10 }
  0x21   :  { %674 = shalt.err (!%p671_p0)
}
  0x22   :  { %45 = dma.hbm_to_vmem [thread:$0]  %s783_s2, 64, %s43_s28, [#allocation6]  }
  0x23   :  { %s728_s9 = smov [#allocation8]  }
  0x24   :  { %s51_s10 = sshll.u32 %s728_s9, 4  ;;  %s52_s10 = int_to_ptr.vmem [resolvable:$true] %s51_s10 }
  0x25   :  { %s683_s11 = scalar_lea.vmem %s52_s10, 8192  ;;  %p688_p2 = scmp.lt.s32.totalorder %s52_s10, %s52_s10 }
  0x26   :  { %p684_p1 = scmp.ne.s32.totalorder %s52_s10, %s683_s11  ;;  %p689_p3 = scmp.lt.s32.totalorder %s683_s11, %s683_s11 }
  0x28   :  { %p690_p4 = por %p689_p3, %p688_p2 }
  0x2a   :  { %p691_p5 = pnand %p690_p4, %p684_p1 }
  0x2c   :  { %694 = shalt.err (!%p691_p5)
}
  0x2d   :  { %s729_s0 = smov 128   ;;  %s730_s12 = smov 8  }
  0x2e   :  { %57 = dma.hbm_to_vmem [thread:$0]  %s784_s3, 8192, %s52_s10, [#allocation9], %s729_s0, %s729_s0, %s730_s12  }
  0x2f   :  { %715 = dma.done.wait [#allocation3], 64  }
  0x30   :  { %716 = vsyncadd [#allocation3], 4294967232 }
  0x31   :  { %717 = dma.done.wait [#allocation6], 8256  }
  0x32   :  { %718 = vsyncadd [#allocation6], 4294959040 }
  0x33   :  { %719 = dma.done.wait [#allocation9], 8192  }
  0x34   :  { %720 = vsyncadd [#allocation9], 4294959104  ;;  %v731_v0 = vmov 0.0   ;;  %v134_v1 = vld [vmem:[#allocation5 + $0x1e8] sm:$0xff]  ;;  %v136_v2 = vld [vmem:[#allocation5 + $0x1f8] sm:$0xff]  ;;  %s732_s15 = smov [#allocation10]  }
  0x35   :  { %223 = vmatprep.mubr.f32.mxu0 %v731_v0  ;;  %294 = vmatprep.mubr.f32.mxu1 %v731_v0  ;;  %v133_v3 = vld [vmem:[#allocation5 + $0x1e0] sm:$0xff]  ;;  %v135_v4 = vld [vmem:[#allocation5 + $0x1f0] sm:$0xff]  ;;  %v130_v5 = vld [vmem:[#allocation5 + $0x1c8] sm:$0xff]  ;;  %s523_s16 = sshll.u32 %s732_s15, 4  ;;  %s524_s16 = int_to_ptr.vmem [resolvable:$true] %s523_s16 }
  0x36   :  { %159 = vmatprep.subr.mxu0 %v134_v1  ;;  %230 = vmatprep.subr.mxu1 %v136_v2  ;;  %v132_v6 = vld [vmem:[#allocation5 + $0x1d8] sm:$0xff]  ;;  %v129_v7 = vld [vmem:[#allocation5 + $0x1c0] sm:$0xff]  ;;  %v131_v8 = vld [vmem:[#allocation5 + $0x1d0] sm:$0xff]  ;;  %s695_s17 = scalar_lea.vmem %s524_s16, 64  ;;  %p700_p7 = scmp.lt.s32.totalorder %s524_s16, %s524_s16 }
  0x37   :  { %160 = vmatpush1.msra.mxu0 %v133_v3  ;;  %231 = vmatpush1.msra.mxu1 %v135_v4  ;;  %v126_v9 = vld [vmem:[#allocation5 + $0x1a8] sm:$0xff]  ;;  %v128_v10 = vld [vmem:[#allocation5 + $0x1b8] sm:$0xff]  ;;  %v125_v11 = vld [vmem:[#allocation5 + $0x1a0] sm:$0xff]  ;;  %p696_p6 = scmp.ne.s32.totalorder %s524_s16, %s695_s17  ;;  %p701_p8 = scmp.lt.s32.totalorder %s695_s17, %s695_s17 }
  0x38   :  { %161 = vmatprep.subr.mxu0 %v130_v5  ;;  %232 = vmatprep.subr.mxu1 %v132_v6  ;;  %v127_v12 = vld [vmem:[#allocation5 + $0x1b0] sm:$0xff]  ;;  %v122_v13 = vld [vmem:[#allocation5 + $0x188] sm:$0xff]  ;;  %v124_v14 = vld [vmem:[#allocation5 + $0x198] sm:$0xff] }
  0x39   :  { %162 = vmatpush1.msra.mxu0 %v129_v7  ;;  %233 = vmatpush1.msra.mxu1 %v131_v8  ;;  %v121_v15 = vld [vmem:[#allocation5 + $0x180] sm:$0xff]  ;;  %v123_v16 = vld [vmem:[#allocation5 + $0x190] sm:$0xff]  ;;  %v118_v17 = vld [vmem:[#allocation5 + $0x168] sm:$0xff]  ;;  %p702_p9 = por %p701_p8, %p700_p7 }
  0x3a   :  { %163 = vmatprep.subr.mxu0 %v126_v9  ;;  %234 = vmatprep.subr.mxu1 %v128_v10  ;;  %v120_v18 = vld [vmem:[#allocation5 + $0x178] sm:$0xff]  ;;  %v117_v19 = vld [vmem:[#allocation5 + $0x160] sm:$0xff]  ;;  %v119_v20 = vld [vmem:[#allocation5 + $0x170] sm:$0xff] }
  0x3b   :  { %164 = vmatpush1.msra.mxu0 %v125_v11  ;;  %235 = vmatpush1.msra.mxu1 %v127_v12  ;;  %v114_v21 = vld [vmem:[#allocation5 + $0x148] sm:$0xff]  ;;  %v116_v22 = vld [vmem:[#allocation5 + $0x158] sm:$0xff]  ;;  %v113_v23 = vld [vmem:[#allocation5 + $0x140] sm:$0xff]  ;;  %p703_p10 = pnand %p702_p9, %p696_p6 }
  0x3c   :  { %165 = vmatprep.subr.mxu0 %v122_v13  ;;  %236 = vmatprep.subr.mxu1 %v124_v14  ;;  %v115_v24 = vld [vmem:[#allocation5 + $0x150] sm:$0xff]  ;;  %v110_v25 = vld [vmem:[#allocation5 + $0x128] sm:$0xff]  ;;  %v112_v26 = vld [vmem:[#allocation5 + $0x138] sm:$0xff] }
  0x3d   :  { %166 = vmatpush1.msra.mxu0 %v121_v15  ;;  %237 = vmatpush1.msra.mxu1 %v123_v16  ;;  %v109_v27 = vld [vmem:[#allocation5 + $0x120] sm:$0xff]  ;;  %v111_v28 = vld [vmem:[#allocation5 + $0x130] sm:$0xff]  ;;  %v106_v29 = vld [vmem:[#allocation5 + $0x108] sm:$0xff] }
  0x3e   :  { %167 = vmatprep.subr.mxu0 %v118_v17  ;;  %238 = vmatprep.subr.mxu1 %v120_v18  ;;  %v108_v30 = vld [vmem:[#allocation5 + $0x118] sm:$0xff]  ;;  %v105_v31 = vld [vmem:[#allocation5 + $0x100] sm:$0xff]  ;;  %v107_v32 = vld [vmem:[#allocation5 + $0x110] sm:$0xff] }
  0x3f   :  { %168 = vmatpush1.msra.mxu0 %v117_v19  ;;  %239 = vmatpush1.msra.mxu1 %v119_v20  ;;  %v102_v33 = vld [vmem:[#allocation5 + $0xe8] sm:$0xff]  ;;  %v104_v34 = vld [vmem:[#allocation5 + $0xf8] sm:$0xff]  ;;  %v101_v35 = vld [vmem:[#allocation5 + $0xe0] sm:$0xff] }
  0x40   :  { %169 = vmatprep.subr.mxu0 %v114_v21  ;;  %240 = vmatprep.subr.mxu1 %v116_v22  ;;  %v103_v36 = vld [vmem:[#allocation5 + $0xf0] sm:$0xff]  ;;  %v98_v37 = vld [vmem:[#allocation5 + $0xc8] sm:$0xff]  ;;  %v100_v38 = vld [vmem:[#allocation5 + $0xd8] sm:$0xff] }
  0x41   :  { %170 = vmatpush1.msra.mxu0 %v113_v23  ;;  %241 = vmatpush1.msra.mxu1 %v115_v24  ;;  %v97_v39 = vld [vmem:[#allocation5 + $0xc0] sm:$0xff]  ;;  %v99_v40 = vld [vmem:[#allocation5 + $0xd0] sm:$0xff]  ;;  %v94_v41 = vld [vmem:[#allocation5 + $0xa8] sm:$0xff] }
  0x42   :  { %171 = vmatprep.subr.mxu0 %v110_v25  ;;  %242 = vmatprep.subr.mxu1 %v112_v26  ;;  %v96_v42 = vld [vmem:[#allocation5 + $0xb8] sm:$0xff]  ;;  %v93_v43 = vld [vmem:[#allocation5 + $0xa0] sm:$0xff]  ;;  %v95_v44 = vld [vmem:[#allocation5 + $0xb0] sm:$0xff] }
  0x43   :  { %172 = vmatpush1.msra.mxu0 %v109_v27  ;;  %243 = vmatpush1.msra.mxu1 %v111_v28  ;;  %v90_v45 = vld [vmem:[#allocation5 + $0x88] sm:$0xff]  ;;  %v92_v46 = vld [vmem:[#allocation5 + $0x98] sm:$0xff]  ;;  %v89_v47 = vld [vmem:[#allocation5 + $0x80] sm:$0xff] }
  0x44   :  { %173 = vmatprep.subr.mxu0 %v106_v29  ;;  %244 = vmatprep.subr.mxu1 %v108_v30  ;;  %v91_v48 = vld [vmem:[#allocation5 + $0x90] sm:$0xff]  ;;  %v86_v49 = vld [vmem:[#allocation5 + $0x68] sm:$0xff]  ;;  %v88_v50 = vld [vmem:[#allocation5 + $0x78] sm:$0xff] }
  0x45   :  { %174 = vmatpush1.msra.mxu0 %v105_v31  ;;  %245 = vmatpush1.msra.mxu1 %v107_v32  ;;  %v85_v51 = vld [vmem:[#allocation5 + $0x60] sm:$0xff]  ;;  %v87_v52 = vld [vmem:[#allocation5 + $0x70] sm:$0xff]  ;;  %v82_v53 = vld [vmem:[#allocation5 + $0x48] sm:$0xff] }
  0x46   :  { %175 = vmatprep.subr.mxu0 %v102_v33  ;;  %246 = vmatprep.subr.mxu1 %v104_v34  ;;  %v84_v54 = vld [vmem:[#allocation5 + $0x58] sm:$0xff]  ;;  %v81_v55 = vld [vmem:[#allocation5 + $0x40] sm:$0xff]  ;;  %v83_v56 = vld [vmem:[#allocation5 + $0x50] sm:$0xff] }
  0x47   :  { %176 = vmatpush1.msra.mxu0 %v101_v35  ;;  %247 = vmatpush1.msra.mxu1 %v103_v36  ;;  %v78_v57 = vld [vmem:[#allocation5 + $0x28] sm:$0xff]  ;;  %v80_v58 = vld [vmem:[#allocation5 + $0x38] sm:$0xff]  ;;  %v77_v59 = vld [vmem:[#allocation5 + $0x20] sm:$0xff] }
  0x48   :  { %177 = vmatprep.subr.mxu0 %v98_v37  ;;  %248 = vmatprep.subr.mxu1 %v100_v38  ;;  %v79_v60 = vld [vmem:[#allocation5 + $0x30] sm:$0xff]  ;;  %v74_v61 = vld [vmem:[#allocation5 + $0x8] sm:$0xff]  ;;  %v76_v62 = vld [vmem:[#allocation5 + $0x18] sm:$0xff] }
  0x49   :  { %178 = vmatpush1.msra.mxu0 %v97_v39  ;;  %249 = vmatpush1.msra.mxu1 %v99_v40  ;;  %v73_v63 = vld [vmem:[#allocation5] sm:$0xff]  ;;  %v75_v0 = vld [vmem:[#allocation5 + $0x10] sm:$0xff]  ;;  %v72_v1 = vld [vmem:[#allocation2] sm:$0xf] }
  0x4a   :  { %179 = vmatprep.subr.mxu0 %v94_v41  ;;  %250 = vmatprep.subr.mxu1 %v96_v42  ;;  %v336_v2 = vld [vmem:[#allocation8 + $0xf8] sm:$0xff]  ;;  %v335_v6 = vld [vmem:[#allocation8 + $0xf0] sm:$0xff]  ;;  %v334_v10 = vld [vmem:[#allocation8 + $0xe8] sm:$0xff] }
  0x4b   :  { %180 = vmatpush1.msra.mxu0 %v93_v43  ;;  %251 = vmatpush1.msra.mxu1 %v95_v44  ;;  %v368_v3 = vld [vmem:[#allocation8 + $0x1f8] sm:$0xff]  ;;  %v367_v7 = vld [vmem:[#allocation8 + $0x1f0] sm:$0xff]  ;;  %v366_v11 = vld [vmem:[#allocation8 + $0x1e8] sm:$0xff] }
  0x4c   :  { %181 = vmatprep.subr.mxu0 %v90_v45  ;;  %252 = vmatprep.subr.mxu1 %v92_v46  ;;  %v320_v4 = vld [vmem:[#allocation8 + $0x78] sm:$0xff]  ;;  %v319_v8 = vld [vmem:[#allocation8 + $0x70] sm:$0xff]  ;;  %v318_v12 = vld [vmem:[#allocation8 + $0x68] sm:$0xff] }
  0x4d   :  { %182 = vmatpush1.msra.mxu0 %v89_v47  ;;  %253 = vmatpush1.msra.mxu1 %v91_v48  ;;  %v352_v5 = vld [vmem:[#allocation8 + $0x178] sm:$0xff]  ;;  %v351_v9 = vld [vmem:[#allocation8 + $0x170] sm:$0xff]  ;;  %v350_v13 = vld [vmem:[#allocation8 + $0x168] sm:$0xff] }
  0x4e   :  { %183 = vmatprep.subr.mxu0 %v86_v49  ;;  %254 = vmatprep.subr.mxu1 %v88_v50  ;;  %v333_v14 = vld [vmem:[#allocation8 + $0xe0] sm:$0xff]  ;;  %v332_v18 = vld [vmem:[#allocation8 + $0xd8] sm:$0xff]  ;;  %v331_v22 = vld [vmem:[#allocation8 + $0xd0] sm:$0xff] }
  0x4f   :  { %184 = vmatpush1.msra.mxu0 %v85_v51  ;;  %255 = vmatpush1.msra.mxu1 %v87_v52  ;;  %v365_v15 = vld [vmem:[#allocation8 + $0x1e0] sm:$0xff]  ;;  %v364_v19 = vld [vmem:[#allocation8 + $0x1d8] sm:$0xff]  ;;  %v363_v23 = vld [vmem:[#allocation8 + $0x1d0] sm:$0xff] }
  0x50   :  { %185 = vmatprep.subr.mxu0 %v82_v53  ;;  %256 = vmatprep.subr.mxu1 %v84_v54  ;;  %v317_v16 = vld [vmem:[#allocation8 + $0x60] sm:$0xff]  ;;  %v316_v20 = vld [vmem:[#allocation8 + $0x58] sm:$0xff]  ;;  %v315_v24 = vld [vmem:[#allocation8 + $0x50] sm:$0xff] }
  0x51   :  { %186 = vmatpush1.msra.mxu0 %v81_v55  ;;  %257 = vmatpush1.msra.mxu1 %v83_v56  ;;  %v349_v17 = vld [vmem:[#allocation8 + $0x160] sm:$0xff]  ;;  %v348_v21 = vld [vmem:[#allocation8 + $0x158] sm:$0xff]  ;;  %v347_v25 = vld [vmem:[#allocation8 + $0x150] sm:$0xff] }
  0x52   :  { %187 = vmatprep.subr.mxu0 %v78_v57  ;;  %258 = vmatprep.subr.mxu1 %v80_v58  ;;  %v330_v26 = vld [vmem:[#allocation8 + $0xc8] sm:$0xff]  ;;  %v329_v30 = vld [vmem:[#allocation8 + $0xc0] sm:$0xff]  ;;  %v328_v34 = vld [vmem:[#allocation8 + $0xb8] sm:$0xff] }
  0x53   :  { %188 = vmatpush1.msra.mxu0 %v77_v59  ;;  %259 = vmatpush1.msra.mxu1 %v79_v60  ;;  %v362_v27 = vld [vmem:[#allocation8 + $0x1c8] sm:$0xff]  ;;  %v361_v31 = vld [vmem:[#allocation8 + $0x1c0] sm:$0xff]  ;;  %v360_v35 = vld [vmem:[#allocation8 + $0x1b8] sm:$0xff] }
  0x54   :  { %189 = vmatprep.subr.mxu0 %v74_v61  ;;  %260 = vmatprep.subr.mxu1 %v76_v62  ;;  %v314_v28 = vld [vmem:[#allocation8 + $0x48] sm:$0xff]  ;;  %v313_v32 = vld [vmem:[#allocation8 + $0x40] sm:$0xff]  ;;  %v312_v36 = vld [vmem:[#allocation8 + $0x38] sm:$0xff] }
  0x55   :  { %190 = vmatpush1.msra.mxu0 %v73_v63  ;;  %261 = vmatpush1.msra.mxu1 %v75_v0  ;;  %v346_v29 = vld [vmem:[#allocation8 + $0x148] sm:$0xff]  ;;  %v345_v33 = vld [vmem:[#allocation8 + $0x140] sm:$0xff]  ;;  %v344_v37 = vld [vmem:[#allocation8 + $0x138] sm:$0xff] }
  0x56   :  { %224 = vmatmul.mubr.f32.vlgmr.msra.gmra.mxu0 %v72_v1  ;;  %295 = vmatmul.mubr.f32.vlgmr.msra.gmra.mxu1 %v72_v1  ;;  %v327_v38 = vld [vmem:[#allocation8 + $0xb0] sm:$0xff]  ;;  %v326_v42 = vld [vmem:[#allocation8 + $0xa8] sm:$0xff]  ;;  %v325_v46 = vld [vmem:[#allocation8 + $0xa0] sm:$0xff] }
  0x57   :  { %535 = vmatprep.subr.mxu0 %v336_v2  ;;  %570 = vmatprep.subr.mxu1 %v368_v3  ;;  %v359_v39 = vld [vmem:[#allocation8 + $0x1b0] sm:$0xff]  ;;  %v358_v43 = vld [vmem:[#allocation8 + $0x1a8] sm:$0xff]  ;;  %v357_v47 = vld [vmem:[#allocation8 + $0x1a0] sm:$0xff]  ;;  %v139_v2 = vlaneseq }
  0x58   :  { %536 = vmatpush3.msra.mxu0 %v320_v4  ;;  %571 = vmatpush3.msra.mxu1 %v352_v5  ;;  %v311_v40 = vld [vmem:[#allocation8 + $0x30] sm:$0xff]  ;;  %v310_v44 = vld [vmem:[#allocation8 + $0x28] sm:$0xff]  ;;  %v309_v48 = vld [vmem:[#allocation8 + $0x20] sm:$0xff] }
  0x59   :  { %537 = vmatprep.subr.mxu0 %v335_v6  ;;  %572 = vmatprep.subr.mxu1 %v367_v7  ;;  %v343_v41 = vld [vmem:[#allocation8 + $0x130] sm:$0xff]  ;;  %v342_v45 = vld [vmem:[#allocation8 + $0x128] sm:$0xff]  ;;  %v341_v49 = vld [vmem:[#allocation8 + $0x120] sm:$0xff]  ;;  %v140_v3 = vshrl.u32 %v139_v2, 7 }
  0x5a   :  { %538 = vmatpush3.msra.mxu0 %v319_v8  ;;  %573 = vmatpush3.msra.mxu1 %v351_v9  ;;  %v324_v50 = vld [vmem:[#allocation8 + $0x98] sm:$0xff]  ;;  %v323_v54 = vld [vmem:[#allocation8 + $0x90] sm:$0xff]  ;;  %v322_v58 = vld [vmem:[#allocation8 + $0x88] sm:$0xff] }
  0x5b   :  { %539 = vmatprep.subr.mxu0 %v334_v10  ;;  %574 = vmatprep.subr.mxu1 %v366_v11  ;;  %v356_v51 = vld [vmem:[#allocation8 + $0x198] sm:$0xff]  ;;  %v355_v55 = vld [vmem:[#allocation8 + $0x190] sm:$0xff]  ;;  %v354_v59 = vld [vmem:[#allocation8 + $0x188] sm:$0xff]  ;;  %v149_v4 = vsub.s32 2, %v140_v3  ;;  %v141_v5 = vsub.s32 0, %v140_v3  ;;  %v145_v7 = vsub.s32 1, %v140_v3 }
  0x5c   :  { %540 = vmatpush3.msra.mxu0 %v318_v12  ;;  %575 = vmatpush3.msra.mxu1 %v350_v13  ;;  %v308_v52 = vld [vmem:[#allocation8 + $0x18] sm:$0xff]  ;;  %v307_v56 = vld [vmem:[#allocation8 + $0x10] sm:$0xff]  ;;  %v306_v60 = vld [vmem:[#allocation8 + $0x8] sm:$0xff]  ;;  %v153_v8 = vsub.s32 3, %v140_v3 }
  0x5d   :  { %541 = vmatprep.subr.mxu0 %v333_v14  ;;  %576 = vmatprep.subr.mxu1 %v365_v15  ;;  %v340_v53 = vld [vmem:[#allocation8 + $0x118] sm:$0xff]  ;;  %v339_v57 = vld [vmem:[#allocation8 + $0x110] sm:$0xff]  ;;  %v338_v61 = vld [vmem:[#allocation8 + $0x108] sm:$0xff] }
  0x5e   :  { %542 = vmatpush3.msra.mxu0 %v317_v16  ;;  %577 = vmatpush3.msra.mxu1 %v349_v17  ;;  %v321_v62 = vld [vmem:[#allocation8 + $0x80] sm:$0xff]  ;;  %v137_v6 = vld [vmem:[#allocation7] sm:$0xf] }
  0x5f   :  { %543 = vmatprep.subr.mxu0 %v332_v18  ;;  %578 = vmatprep.subr.mxu1 %v364_v19  ;;  %v353_v63 = vld [vmem:[#allocation8 + $0x180] sm:$0xff]  ;;  %v150_v9 = vrot.slane %v137_v6, %v149_v4  ;;  %v142_v10 = vrot.slane %v137_v6, %v141_v5  ;;  %v146_v11 = vrot.slane %v137_v6, %v145_v7 }
  0x60   :  { %544 = vmatpush3.msra.mxu0 %v316_v20  ;;  %579 = vmatpush3.msra.mxu1 %v348_v21  ;;  %v305_v0 = vld [vmem:[#allocation8] sm:$0xff]  ;;  %v154_v12 = vrot.slane %v137_v6, %v153_v8 }
  0x61   :  { %545 = vmatprep.subr.mxu0 %v331_v22  ;;  %580 = vmatprep.subr.mxu1 %v363_v23  ;;  %v337_v1 = vld [vmem:[#allocation8 + $0x100] sm:$0xff] }
  0x62   :  { %546 = vmatpush3.msra.mxu0 %v315_v24  ;;  %581 = vmatpush3.msra.mxu1 %v347_v25 }
  0x63   :  { %547 = vmatprep.subr.mxu0 %v330_v26  ;;  %582 = vmatprep.subr.mxu1 %v362_v27  ;;  %v534_v27 = vld [vmem:[%s785_s4] ss:$0 sm:$0xff] }
  0x64   :  { %548 = vmatpush3.msra.mxu0 %v314_v28  ;;  %583 = vmatpush3.msra.mxu1 %v346_v29 }
  0x65   :  { %549 = vmatprep.subr.mxu0 %v329_v30  ;;  %584 = vmatprep.subr.mxu1 %v361_v31 }
  0x66   :  { %550 = vmatpush3.msra.mxu0 %v313_v32  ;;  %585 = vmatpush3.msra.mxu1 %v345_v33 }
  0x67   :  { %551 = vmatprep.subr.mxu0 %v328_v34  ;;  %586 = vmatprep.subr.mxu1 %v360_v35 }
  0x68   :  { %552 = vmatpush3.msra.mxu0 %v312_v36  ;;  %587 = vmatpush3.msra.mxu1 %v344_v37 }
  0x69   :  { %553 = vmatprep.subr.mxu0 %v327_v38  ;;  %588 = vmatprep.subr.mxu1 %v359_v39 }
  0x6a   :  { %554 = vmatpush3.msra.mxu0 %v311_v40  ;;  %589 = vmatpush3.msra.mxu1 %v343_v41 }
  0x6b   :  { %555 = vmatprep.subr.mxu0 %v326_v42  ;;  %590 = vmatprep.subr.mxu1 %v358_v43 }
  0x6c   :  { %556 = vmatpush3.msra.mxu0 %v310_v44  ;;  %591 = vmatpush3.msra.mxu1 %v342_v45 }
  0x6d   :  { %557 = vmatprep.subr.mxu0 %v325_v46  ;;  %592 = vmatprep.subr.mxu1 %v357_v47 }
  0x6e   :  { %558 = vmatpush3.msra.mxu0 %v309_v48  ;;  %593 = vmatpush3.msra.mxu1 %v341_v49 }
  0x6f   :  { %559 = vmatprep.subr.mxu0 %v324_v50  ;;  %594 = vmatprep.subr.mxu1 %v356_v51 }
  0x70   :  { %560 = vmatpush3.msra.mxu0 %v308_v52  ;;  %595 = vmatpush3.msra.mxu1 %v340_v53 }
  0x71   :  { %561 = vmatprep.subr.mxu0 %v323_v54  ;;  %596 = vmatprep.subr.mxu1 %v355_v55 }
  0x72   :  { %562 = vmatpush3.msra.mxu0 %v307_v56  ;;  %597 = vmatpush3.msra.mxu1 %v339_v57 }
  0x73   :  { %563 = vmatprep.subr.mxu0 %v322_v58  ;;  %598 = vmatprep.subr.mxu1 %v354_v59 }
  0x74   :  { %564 = vmatpush3.msra.mxu0 %v306_v60  ;;  %599 = vmatpush3.msra.mxu1 %v338_v61 }
  0x75   :  { %565 = vmatprep.subr.mxu0 %v321_v62  ;;  %600 = vmatprep.subr.mxu1 %v353_v63 }
  0x76   :  { %566 = vmatpush3.msra.mxu0 %v305_v0  ;;  %601 = vmatpush3.msra.mxu1 %v337_v1 }
 0x116   :  { %v225_v13 = vpop.f32.mrf.mxu0  ;;  %v296_v14 = vpop.f32.mrf.mxu1 }
 0x117   :  { %v297_v15 = vadd.f32 %v296_v14, %v150_v9  ;;  %v226_v16 = vadd.f32 %v225_v13, %v142_v10 }
 0x118   :  { %v227_v17 = vpop.f32.mrf.mxu0  ;;  %v298_v18 = vpop.f32.mrf.mxu1 }
 0x119   :  { %v228_v19 = vadd.f32 %v227_v17, %v146_v11  ;;  %v299_v20 = vadd.f32 %v298_v18, %v154_v12  ;;  %v303_v21 = vmax.f32 %v297_v15, 0.0  ;;  %v301_v24 = vmax.f32 %v226_v16, 0.0 }
 0x11b   :  { %v302_v22 = vmax.f32 %v228_v19, 0.0  ;;  %v304_v23 = vmax.f32 %v299_v20, 0.0 }
 0x11d   :  { %440 = vmatprep.mubr.f32.mxu0 %v302_v22  ;;  %510 = vmatprep.mubr.f32.mxu1 %v304_v23 }
 0x11e   :  { %441 = vmatmul.mubr.f32.vlgmr.msra.gmra.mxu0 %v301_v24  ;;  %511 = vmatmul.mubr.f32.vlgmr.msra.gmra.mxu1 %v303_v21 }
 0x1de   :  { %v567_v25 = vpop.f32.mrf.mxu0  ;;  %v602_v26 = vpop.f32.mrf.mxu1 }
 0x1e0   :  { %v568_v28 = vpop.f32.mrf.mxu0  ;;  %v603_v29 = vpop.f32.mrf.mxu1 }
 0x1e1   :  { %v569_v30 = vadd.f32 %v568_v28, %v567_v25  ;;  %v604_v32 = vadd.f32 %v603_v29, %v602_v26 }
 0x1e3   :  { %v443_v31 = vadd.f32 %v569_v30, %v534_v27 }
 0x1e5   :  { %v513_v33 = vadd.f32 %v604_v32, %v443_v31 }
 0x1e7   :  { %516 = vst [vmem:[#allocation10] sm:$0xf] %v513_v33 }
 0x1e8   :  { %706 = shalt.err (!%p703_p10)
}
 0x1e9   :  { %526 = dma.vmem_to_hbm [thread:$0]  %s524_s16, 64, %s786_s5, [#allocation4]  }
 0x1ea   :  { %721 = dma.done.wait [#allocation4], 64  }
 0x1eb   :  { %722 = vsyncadd [#allocation4], 4294967232 }
 0x1ec   :  { %530 = vsyncpa [#allocation3], 1 }
 0x1ed   :  { %531 = vsyncpa [#allocation6], 1 }
 0x1ee   :  { %532 = vsyncpa [#allocation9], 1 }
 0x1ef   :  { %533 = vsyncpa [#allocation4], 1 }

</bundles_post_ra>
